<compile_context>
chip_gen: v6e
topology: v6e:2x2x1
jax: 0.10.0
libtpu: 0.0.40
codegen_flags: <defaults>
</compile_context>

<pallas_src>
import math

import jax
import jax.numpy as jnp
from jax.experimental import pallas as pl
from jax.experimental.pallas import tpu as pltpu

IN_DIM, HID, OUT_DIM = 10, 100, 15
IN_PAD = 16            # padded input feature width (10 features + ones column + pad)
PAD = 128              # lane width for hidden / output tiles
ONES_COL = IN_DIM      # column of padded x that carries 1.0 (layer-1 bias fold)
CARRY_COL = HID        # column of h1/h2 that carries 1.0 (layer-2/3 bias fold)
NEG_INF = -1e30        # masks padded logit columns out of the softmax


def _round_up(n, m):
    return ((n + m - 1) // m) * m


def _leaky_relu(x, negative_slope=0.01):
    return jnp.where(x > 0, x, negative_slope * x)


# ----------------------------------------------------------------------------- kernel
def actor_net_kernel(x_ref, w_ref, o_ref):
    x = x_ref[...]                                                   # [TB, 16] bf16

    # fc1 + leaky_relu (bias folded via the ones column of x; only the first 16
    # K-rows of the layer-1 weight tile participate).
    h = jnp.dot(x, w_ref[0, :IN_PAD, :], preferred_element_type=jnp.float32)
    h = _leaky_relu(h).astype(jnp.bfloat16)                          # [TB, 128]

    # fc2 + leaky_relu (bias folded via the carry column, which stays exactly 1.0).
    h = jnp.dot(h, w_ref[1], preferred_element_type=jnp.float32)
    h = _leaky_relu(h).astype(jnp.bfloat16)

    # fc3 logits; padded columns (15..127) receive -1e30 from the folded "bias" row.
    logits = jnp.dot(h, w_ref[2], preferred_element_type=jnp.float32)  # [TB, 128] f32

    # Numerically stable softmax over the full 128 lanes (padded lanes -> exp == 0).
    # Exact divide: negligible cost in this HBM-bound kernel, and rows must sum to 1
    # tightly for Categorical sampling / log_prob.
    m = jnp.max(logits, axis=-1, keepdims=True)
    e = jnp.exp(logits - m)
    denom = jnp.sum(e, axis=-1, keepdims=True)
    o_ref[...] = (e / denom).astype(o_ref.dtype)


# ----------------------------------------------------------------------------- wrapper
def pack_params(w1, b1, w2, b2, w3, b3):
    """Fold PyTorch-layout params (W:[out,in], b:[out]) into one bf16 slab [3,128,128]."""
    slab = jnp.zeros((3, PAD, PAD), jnp.float32)
    # layer 1: rows 0..9 = W1^T, row ONES_COL = b1, carry 1.0 routed into CARRY_COL
    slab = slab.at[0, :IN_DIM, :HID].set(w1.T)
    slab = slab.at[0, ONES_COL, :HID].set(b1)
    slab = slab.at[0, ONES_COL, CARRY_COL].set(1.0)
    # layer 2: rows 0..99 = W2^T, row CARRY_COL = b2, keep the carry 1.0 alive
    slab = slab.at[1, :HID, :HID].set(w2.T)
    slab = slab.at[1, CARRY_COL, :HID].set(b2)
    slab = slab.at[1, CARRY_COL, CARRY_COL].set(1.0)
    # layer 3: rows 0..99 = W3^T, row CARRY_COL = b3, padded logit cols -> -1e30
    slab = slab.at[2, :HID, :OUT_DIM].set(w3.T)
    slab = slab.at[2, CARRY_COL, :OUT_DIM].set(b3)
    slab = slab.at[2, CARRY_COL, OUT_DIM:].set(NEG_INF)
    return slab.astype(jnp.bfloat16)


def _pad_inputs(x, b_pad):
    """Build the [b_pad, 16] bf16 input slab in one shot (features | 1.0 | zero pad)."""
    B = x.shape[0]
    xp = jnp.concatenate(
        [x.astype(jnp.bfloat16),
         jnp.ones((B, 1), jnp.bfloat16),                       # bias carry for layer 1
         jnp.zeros((B, IN_PAD - IN_DIM - 1), jnp.bfloat16)],
        axis=1)                                                # [B, 16]
    if b_pad > B:
        xp = jnp.concatenate(
            [xp, jnp.zeros((b_pad - B, IN_PAD), jnp.bfloat16)], axis=0)
    return xp


def actor_net_probs_padded(x, w_slab, *, tb=None):
    """Fast path: returns the padded [b_pad, 128] bf16 prob slab (pad lanes have the
    pad-column probs ~0; pad batch rows are uniform 1/128 and must be masked by the
    caller if consumed directly)."""
    B = x.shape[0]
    if tb is None:
        # Large, sublane-packed batch tile (bf16 vreg is [16,128]); v7x: consider
        # tb=2048..4096 with >= 2 grid steps so both TensorCores get work.
        tb = min(1024, _round_up(B, 16))
    b_pad = _round_up(B, tb)
    xp = _pad_inputs(x, b_pad)

    return pl.pallas_call(
        actor_net_kernel,
        out_shape=jax.ShapeDtypeStruct((b_pad, PAD), jnp.bfloat16),
        grid=(b_pad // tb,),
        in_specs=[
            pl.BlockSpec((tb, IN_PAD), lambda i: (i, 0)),       # batch-tiled activations
            pl.BlockSpec((3, PAD, PAD), lambda i: (0, 0, 0)),   # resident weight slab
        ],
        out_specs=pl.BlockSpec((tb, PAD), lambda i: (i, 0)),
        compiler_params=pltpu.CompilerParams(
            dimension_semantics=("parallel",)),                 # megacore sharding
    )(xp, w_slab)


def actor_net_forward(x, w_slab, *, tb=None):
    """Convenience path: x [B,10] f32 -> probs [B,15] f32 (== F.softmax(fc3(...)))."""
    B = x.shape[0]
    probs_pad = actor_net_probs_padded(x, w_slab, tb=tb)
    # For large-batch inference prefer consuming probs_pad directly (this slice re-reads
    # the whole slab); at RL batch sizes it is negligible.
    return probs_pad[:B, :OUT_DIM].astype(jnp.float32)


# ----------------------------------------------------------------------------- init / reference
def init_params(key):
    """PyTorch-layout params: weights xavier_uniform_, biases U(-1/sqrt(fan_in), ...)."""
    dims = [(IN_DIM, HID), (HID, HID), (HID, OUT_DIM)]
    params = []
    keys = jax.random.split(key, 2 * len(dims))
    for i, (fan_in, fan_out) in enumerate(dims):
        w_bound = math.sqrt(6.0 / (fan_in + fan_out))
        w = jax.random.uniform(keys[2 * i], (fan_out, fan_in),
                               minval=-w_bound, maxval=w_bound, dtype=jnp.float32)
        b_bound = 1.0 / math.sqrt(fan_in)
        b = jax.random.uniform(keys[2 * i + 1], (fan_out,),
                               minval=-b_bound, maxval=b_bound, dtype=jnp.float32)
        params += [w, b]
    return tuple(params)


def actor_net_reference(x, params):
    w1, b1, w2, b2, w3, b3 = params
    h = jax.nn.leaky_relu(x @ w1.T + b1, 0.01)
    h = jax.nn.leaky_relu(h @ w2.T + b2, 0.01)
    return jax.nn.softmax(h @ w3.T + b3, axis=-1)


if __name__ == "__main__":
    key = jax.random.PRNGKey(0)
    pkey, xkey = jax.random.split(key)

    params = init_params(pkey)
    w_slab = pack_params(*params)
    x = jax.random.normal(xkey, (8, 10), dtype=jnp.float32)   # batch=8, state dim=10

    probs = actor_net_forward(x, w_slab)
    probs = jax.block_until_ready(probs)

    # Sanity: rows of a Categorical's prob matrix must sum to 1 (bf16 output rounding
    # bounds the row-sum error well below 1e-2; the softmax divide itself is exact).
    assert probs.shape == (8, 15)
    row_sums = jnp.sum(probs, axis=-1)
    assert bool(jnp.all(jnp.abs(row_sums - 1.0) < 1e-2)), row_sums

    # Cross-check against a pure-JAX f32 reference (bf16 weights/activations => loose tol).
    ref = actor_net_reference(x, params)
    assert bool(jnp.max(jnp.abs(probs - ref)) < 5e-2)

    # TODO(synk): torch.distributions.Categorical itself has no Pallas equivalent; the
    # kernel returns its `probs` matrix (sampling / log_prob can be done in plain JAX).
    print("KERNEL_OK")
</pallas_src>

<mosaic_0001>
module attributes {stable_mosaic.version = 11 : i64} {
  func.func @actor_net_kernel(%arg0: i32, %arg1: memref<16x16xbf16, #tpu.memory_space<vmem>>, %arg2: memref<3x128x128xbf16, #tpu.memory_space<vmem>>, %arg3: memref<16x128xbf16, #tpu.memory_space<vmem>>) attributes {dimension_semantics = [#tpu.dimension_semantics<parallel>], iteration_bounds = array<i64: 1>, scalar_prefetch = 0 : i64, scratch_operands = 0 : i64, tpu.core_type = #tpu.core_type<tc>, window_params = [{transform_indices = @transform_0, window_bounds = array<i64: 16, 16>}, {pipeline_mode = #tpu.pipeline_mode<synchronous>, transform_indices = @transform_1, window_bounds = array<i64: 3, 128, 128>}, {transform_indices = @transform_2, window_bounds = array<i64: 16, 128>}]} {
    %c0 = arith.constant 0 : index
    %c0_0 = arith.constant 0 : index
    %0 = vector.load %arg1[%c0, %c0_0] : memref<16x16xbf16, #tpu.memory_space<vmem>>, vector<16x16xbf16>
    %c0_1 = arith.constant 0 : index
    %c0_2 = arith.constant 0 : index
    %c0_3 = arith.constant 0 : index
    %1 = vector.load %arg2[%c0_1, %c0_2, %c0_3] : memref<3x128x128xbf16, #tpu.memory_space<vmem>>, vector<1x16x128xbf16>
    %2 = vector.shape_cast %1 : vector<1x16x128xbf16> to vector<16x128xbf16>
    %cst = arith.constant dense<0.000000e+00> : vector<16x128xf32>
    %3 = tpu.matmul %0, %2, %cst {dimension_numbers = #tpu.dot_dimension_numbers<[1], [0], [0], [1], [0, 0, 1, 1], [], []>} : vector<16x16xbf16>, vector<16x128xbf16>, vector<16x128xf32> -> vector<16x128xf32>
    %cst_4 = arith.constant 0.000000e+00 : f32
    %4 = vector.broadcast %cst_4 : f32 to vector<16x128xf32>
    %5 = arith.cmpf ogt, %3, %4 : vector<16x128xf32>
    %cst_5 = arith.constant 0.00999999977 : f32
    %6 = vector.broadcast %cst_5 : f32 to vector<16x128xf32>
    %7 = arith.mulf %6, %3 : vector<16x128xf32>
    %8 = arith.select %5, %3, %7 : vector<16x128xi1>, vector<16x128xf32>
    %9 = arith.truncf %8 : vector<16x128xf32> to vector<16x128xbf16>
    %c1 = arith.constant 1 : index
    %c0_6 = arith.constant 0 : index
    %c0_7 = arith.constant 0 : index
    %10 = vector.load %arg2[%c1, %c0_6, %c0_7] : memref<3x128x128xbf16, #tpu.memory_space<vmem>>, vector<1x128x128xbf16>
    %11 = vector.shape_cast %10 : vector<1x128x128xbf16> to vector<128x128xbf16>
    %cst_8 = arith.constant dense<0.000000e+00> : vector<16x128xf32>
    %12 = tpu.matmul %9, %11, %cst_8 {dimension_numbers = #tpu.dot_dimension_numbers<[1], [0], [0], [1], [0, 0, 1, 1], [], []>} : vector<16x128xbf16>, vector<128x128xbf16>, vector<16x128xf32> -> vector<16x128xf32>
    %cst_9 = arith.constant 0.000000e+00 : f32
    %13 = vector.broadcast %cst_9 : f32 to vector<16x128xf32>
    %14 = arith.cmpf ogt, %12, %13 : vector<16x128xf32>
    %cst_10 = arith.constant 0.00999999977 : f32
    %15 = vector.broadcast %cst_10 : f32 to vector<16x128xf32>
    %16 = arith.mulf %15, %12 : vector<16x128xf32>
    %17 = arith.select %14, %12, %16 : vector<16x128xi1>, vector<16x128xf32>
    %18 = arith.truncf %17 : vector<16x128xf32> to vector<16x128xbf16>
    %c2 = arith.constant 2 : index
    %c0_11 = arith.constant 0 : index
    %c0_12 = arith.constant 0 : index
    %19 = vector.load %arg2[%c2, %c0_11, %c0_12] : memref<3x128x128xbf16, #tpu.memory_space<vmem>>, vector<1x128x128xbf16>
    %20 = vector.shape_cast %19 : vector<1x128x128xbf16> to vector<128x128xbf16>
    %cst_13 = arith.constant dense<0.000000e+00> : vector<16x128xf32>
    %21 = tpu.matmul %18, %20, %cst_13 {dimension_numbers = #tpu.dot_dimension_numbers<[1], [0], [0], [1], [0, 0, 1, 1], [], []>} : vector<16x128xbf16>, vector<128x128xbf16>, vector<16x128xf32> -> vector<16x128xf32>
    %cst_14 = arith.constant dense<0xFF800000> : vector<16xf32>
    %22 = vector.multi_reduction <maximumf>, %21, %cst_14 [1] : vector<16x128xf32> to vector<16xf32>
    %23 = vector.shape_cast %22 : vector<16xf32> to vector<16x1xf32>
    %24 = vector.broadcast %23 : vector<16x1xf32> to vector<16x128xf32>
    %25 = arith.subf %21, %24 : vector<16x128xf32>
    %26 = math.exp %25 : vector<16x128xf32>
    %cst_15 = arith.constant dense<0.000000e+00> : vector<16xf32>
    %27 = vector.multi_reduction <add>, %26, %cst_15 [1] : vector<16x128xf32> to vector<16xf32>
    %28 = vector.shape_cast %27 : vector<16xf32> to vector<16x1xf32>
    %29 = vector.broadcast %28 : vector<16x1xf32> to vector<16x128xf32>
    %30 = arith.divf %26, %29 : vector<16x128xf32>
    %31 = arith.truncf %30 : vector<16x128xf32> to vector<16x128xbf16>
    %c0_16 = arith.constant 0 : index
    %c0_17 = arith.constant 0 : index
    %32 = vector.load %arg3[%c0_16, %c0_17] : memref<16x128xbf16, #tpu.memory_space<vmem>>, vector<16x128xbf16>
    tpu.vector_store %arg3[%c0_16, %c0_17], %31 {strides = array<i32>} : memref<16x128xbf16, #tpu.memory_space<vmem>>, vector<16x128xbf16>,
    return
  }
  func.func @transform_0(%arg0: i32) -> (i32, i32) {
    %c0_i32 = arith.constant 0 : i32
    %c0_i32_0 = arith.constant 0 : i32
    return %arg0, %c0_i32 : i32, i32
  }
  func.func @transform_1(%arg0: i32) -> (i32, i32, i32) {
    %c0_i32 = arith.constant 0 : i32
    %c0_i32_0 = arith.constant 0 : i32
    %c0_i32_1 = arith.constant 0 : i32
    %c0_i32_2 = arith.constant 0 : i32
    return %c0_i32, %c0_i32_0, %c0_i32_1 : i32, i32, i32
  }
  func.func @transform_2(%arg0: i32) -> (i32, i32) {
    %c0_i32 = arith.constant 0 : i32
    %c0_i32_0 = arith.constant 0 : i32
    return %arg0, %c0_i32 : i32, i32
  }
}

</mosaic_0001>

<bundles_post_ra>
// kernel: tpu_custom_call.1
= control target key start
LH: loop header
LB: loop body
LE: loop exit
PB: predicated region body
PF: predicated region fallthrough
CT: control target
= control target key end

     0   :  { %7 = vsyncpa [#allocation3], 0  ;;  %s626_s0 = inlined_call_operand.hbm [shape: bf16[16,16], index: 0, kind: input, shape index: {}]   ;;  %s627_s1 = inlined_call_operand.hbm [shape: bf16[3,128,128], index: 1, kind: input, shape index: {}]   ;;  %s628_s2 = inlined_call_operand.hbm [shape: bf16[16,128], index: 2, kind: output, shape index: {}]  }
   0x1   :  { %8 = vsyncpa [#allocation6], 0 }
   0x2   :  { %9 = vsyncpa [#allocation4], 0  ;;  %s566_s9 = smov [#allocation2]  }
   0x3   :  { %s15_s10 = sshll.u32 %s566_s9, 4  ;;  %s16_s10 = int_to_ptr.vmem [resolvable:$true] %s15_s10 }
   0x4   :  { %s508_s11 = scalar_lea.vmem %s16_s10, 128  ;;  %p513_p1 = scmp.lt.s32.totalorder %s16_s10, %s16_s10 }
   0x5   :  { %p509_p0 = scmp.ne.s32.totalorder %s16_s10, %s508_s11  ;;  %p514_p2 = scmp.lt.s32.totalorder %s508_s11, %s508_s11 }
   0x7   :  { %p515_p3 = por %p514_p2, %p513_p1 }
   0x9   :  { %p516_p4 = pnand %p515_p3, %p509_p0 }
   0xb   :  { %519 = shalt.err (!%p516_p4)
}
   0xc   :  { %s567_s12 = smov 64   ;;  %s568_s13 = smov 4  }
   0xd   :  { %21 = dma.hbm_to_vmem [thread:$0]  %s626_s0, 128, %s16_s10, [#allocation3], %s567_s12, %s567_s12, %s568_s13  }
   0xe   :  { %s569_s16 = smov [#allocation5]  }
   0xf   :  { %s27_s17 = sshll.u32 %s569_s16, 4  ;;  %s28_s17 = int_to_ptr.vmem [resolvable:$true] %s27_s17 }
  0x10   :  { %s528_s18 = scalar_lea.vmem %s28_s17, 3072  ;;  %p533_p6 = scmp.lt.s32.totalorder %s28_s17, %s28_s17 }
  0x11   :  { %p529_p5 = scmp.ne.s32.totalorder %s28_s17, %s528_s18  ;;  %p534_p7 = scmp.lt.s32.totalorder %s528_s18, %s528_s18 }
  0x13   :  { %p535_p8 = por %p534_p7, %p533_p6 }
  0x15   :  { %p536_p9 = pnand %p535_p8, %p529_p5 }
  0x17   :  { %539 = shalt.err (!%p536_p9)
}
  0x18   :  { %33 = dma.hbm_to_vmem [thread:$0]  %s627_s1, 3072, %s28_s17, [#allocation6], %s567_s12, %s567_s12, %s568_s13  }
  0x19   :  { %560 = dma.done.wait [#allocation3], 128  }
  0x1a   :  { %561 = vsyncadd [#allocation3], 4294967168 }
  0x1b   :  { %562 = dma.done.wait [#allocation6], 3072  }
  0x1c   :  { %563 = vsyncadd [#allocation6], 4294964224  ;;  %v570_v0 = vmov 0.0   ;;  %vm571_vm0 = vmmov 0   ;;  %v474_v1 = vld [vmem:[#allocation5] sm:$0xff]   ;;  %v475_v2 = vld [vmem:[#allocation2] sm:$0xff]  }
  0x1d   :  { %421 = vmatprep.subr.bf16.mxu0 %v570_v0  ;;  %423 = vmatprep.mubr.msk.bf16.mxu0 %vm571_vm0, %v570_v0  ;;  %vm56_vm1 = vcmask 130048   ;;  %v476_v3 = vld [vmem:[#allocation5 + $0x78] sm:$0xff]   ;;  %v477_v4 = vld [vmem:[#allocation5 + $0x70] sm:$0xff]   ;;  %v478_v5 = vld [vmem:[#allocation5 + $0x68] sm:$0xff]   ;;  %s572_s0 = smov [#allocation7]  }
  0x1e   :  { %427 = vmatprep.subr.bf16.mxu1 %v570_v0  ;;  %443 = vmatprep.mubr.msk.bf16.mxu1 %vm571_vm0, %v570_v0  ;;  %v479_v6 = vld [vmem:[#allocation5 + $0x60] sm:$0xff]   ;;  %v480_v7 = vld [vmem:[#allocation5 + $0x58] sm:$0xff]   ;;  %v481_v8 = vld [vmem:[#allocation5 + $0x50] sm:$0xff]   ;;  %s360_s1 = sshll.u32 %s572_s0, 4  ;;  %s361_s1 = int_to_ptr.vmem [resolvable:$true] %s360_s1 }
  0x1f   :  { %422 = vmatpush3.bf16.msra.mxu0 %v474_v1  ;;  %428 = vmatpush3.bf16.msra.mxu1 %v476_v3  ;;  %v482_v9 = vld [vmem:[#allocation5 + $0x48] sm:$0xff]   ;;  %v483_v10 = vld [vmem:[#allocation5 + $0x40] sm:$0xff]   ;;  %v484_v11 = vld [vmem:[#allocation5 + $0xb8] sm:$0xff]   ;;  %s540_s21 = scalar_lea.vmem %s361_s1, 128  ;;  %p545_p11 = scmp.lt.s32.totalorder %s361_s1, %s361_s1 }
  0x20   :  { %447 = vmatprep.subr.bf16.mxu0 %v570_v0  ;;  %429 = vmatprep.subr.bf16.mxu1 %v570_v0  ;;  %v485_v12 = vld [vmem:[#allocation5 + $0xb0] sm:$0xff]   ;;  %v486_v13 = vld [vmem:[#allocation5 + $0xa8] sm:$0xff]   ;;  %v487_v14 = vld [vmem:[#allocation5 + $0xa0] sm:$0xff]   ;;  %p541_p10 = scmp.ne.s32.totalorder %s361_s1, %s540_s21  ;;  %p546_p12 = scmp.lt.s32.totalorder %s540_s21, %s540_s21 }
  0x21   :  { %v488_v15 = vld [vmem:[#allocation5 + $0x98] sm:$0xff]   ;;  %v489_v16 = vld [vmem:[#allocation5 + $0x90] sm:$0xff]   ;;  %v490_v26 = vld [vmem:[#allocation5 + $0x88] sm:$0xff]  }
  0x22   :  { %424 = vmatmul.mubr.msk.bf16.vlgmr.msra.gmra.mxu0 %vm56_vm1, %v475_v2  ;;  %v491_v27 = vld [vmem:[#allocation5 + $0x80] sm:$0xff]   ;;  %p547_p13 = por %p546_p12, %p545_p11 }
  0x23   :  { %463 = vmatprep.mubr.msk.bf16.mxu0 %vm571_vm0, %v570_v0  ;;  %430 = vmatpush3.bf16.msra.mxu1 %v477_v4 }
  0x24   :  { %431 = vmatprep.subr.bf16.mxu1 %v570_v0  ;;  %448 = vmatpush3.bf16.msra.mxu0 %v484_v11  ;;  %p548_p0 = pnand %p547_p13, %p541_p10 }
  0x25   :  { %449 = vmatprep.subr.bf16.mxu0 %v570_v0 }
  0x27   :  { %432 = vmatpush3.bf16.msra.mxu1 %v478_v5 }
  0x28   :  { %433 = vmatprep.subr.bf16.mxu1 %v570_v0  ;;  %450 = vmatpush3.bf16.msra.mxu0 %v485_v12 }
  0x29   :  { %451 = vmatprep.subr.bf16.mxu0 %v570_v0 }
  0x2b   :  { %434 = vmatpush3.bf16.msra.mxu1 %v479_v6 }
  0x2c   :  { %435 = vmatprep.subr.bf16.mxu1 %v570_v0  ;;  %452 = vmatpush3.bf16.msra.mxu0 %v486_v13 }
  0x2d   :  { %453 = vmatprep.subr.bf16.mxu0 %v570_v0 }
  0x2f   :  { %436 = vmatpush3.bf16.msra.mxu1 %v480_v7 }
  0x30   :  { %437 = vmatprep.subr.bf16.mxu1 %v570_v0  ;;  %454 = vmatpush3.bf16.msra.mxu0 %v487_v14 }
  0x31   :  { %455 = vmatprep.subr.bf16.mxu0 %v570_v0 }
  0x33   :  { %438 = vmatpush3.bf16.msra.mxu1 %v481_v8 }
  0x34   :  { %439 = vmatprep.subr.bf16.mxu1 %v570_v0  ;;  %456 = vmatpush3.bf16.msra.mxu0 %v488_v15 }
  0x35   :  { %457 = vmatprep.subr.bf16.mxu0 %v570_v0 }
  0x37   :  { %440 = vmatpush3.bf16.msra.mxu1 %v482_v9 }
  0x38   :  { %441 = vmatprep.subr.bf16.mxu1 %v570_v0  ;;  %458 = vmatpush3.bf16.msra.mxu0 %v489_v16 }
  0x39   :  { %459 = vmatprep.subr.bf16.mxu0 %v570_v0 }
  0x3b   :  { %442 = vmatpush3.bf16.msra.mxu1 %v483_v10 }
  0x3c   :  { %460 = vmatpush3.bf16.msra.mxu0 %v490_v26 }
  0x3d   :  { %461 = vmatprep.subr.bf16.mxu0 %v570_v0 }
  0x40   :  { %462 = vmatpush3.bf16.msra.mxu0 %v491_v27 }
  0xe2   :  { %v94_v17 = vpop.f32.mrf.mxu0 }
  0xe3   :  { %v103_v19 = vmul.f32 0.01, %v94_v17  ;;  %vm101_vm2 = vcmp.gt.f32.partialorder %v94_v17, 0.0 }
  0xe4   :  { %v425_v18 = vpop.f32.mrf.mxu0 }
  0xe5   :  { %v105_v23 = vsel %vm101_vm2, %v94_v17, %v103_v19 }
  0xe6   :  { %v97_v20 = vpop.f32.mrf.mxu0 }
  0xe7   :  { %vm102_vm3 = vcmp.gt.f32.partialorder %v97_v20, 0.0  ;;  %v104_v21 = vmul.f32 0.01, %v97_v20 }
  0xe8   :  { %v426_v22 = vpop.f32.mrf.mxu0 }
  0xe9   :  { %v106_v24 = vsel %vm102_vm3, %v97_v20, %v104_v21 }
  0xea   :  { %v107_v25 = vpack.c.bf16 %v106_v24, %v105_v23 }
  0xec   :  { %444 = vmatmul.mubr.bf16.vlgmr.msra.gmra.mxu1 %v107_v25 }
 0x1ac   :  { %v207_v28 = vpop.f32.mrf.mxu1 }
 0x1ad   :  { %v216_v30 = vmul.f32 0.01, %v207_v28  ;;  %vm214_vm4 = vcmp.gt.f32.partialorder %v207_v28, 0.0 }
 0x1ae   :  { %v445_v29 = vpop.f32.mrf.mxu1 }
 0x1af   :  { %v218_v34 = vsel %vm214_vm4, %v207_v28, %v216_v30 }
 0x1b0   :  { %v210_v31 = vpop.f32.mrf.mxu1 }
 0x1b1   :  { %vm215_vm5 = vcmp.gt.f32.partialorder %v210_v31, 0.0  ;;  %v217_v32 = vmul.f32 0.01, %v210_v31 }
 0x1b2   :  { %v446_v33 = vpop.f32.mrf.mxu1 }
 0x1b3   :  { %v219_v35 = vsel %vm215_vm5, %v210_v31, %v217_v32 }
 0x1b4   :  { %v220_v36 = vpack.c.bf16 %v219_v35, %v218_v34 }
 0x1b6   :  { %464 = vmatmul.mubr.bf16.vlgmr.msra.gmra.mxu0 %v220_v36 }
 0x276   :  { %v320_v37 = vpop.f32.mrf.mxu0 }
 0x277   :  { %327 = vmax.xlane.f32.xlu0 %v320_v37 }
 0x278   :  { %v465_v38 = vpop.f32.mrf.mxu0 }
 0x27a   :  { %v323_v39 = vpop.f32.mrf.mxu0 }
 0x27b   :  { %329 = vmax.xlane.f32.xlu0 %v323_v39 }
 0x27c   :  { %v466_v40 = vpop.f32.mrf.mxu0 }
 0x300   :  { %v328_v41 = vpop.xlane.xlu0 %327 }
 0x301   :  { %v331_v42 = vsub.f32 %v320_v37, %v328_v41 }
 0x303   :  { %v333_v43 = vmul.f32 1.442695, %v331_v42 }
 0x304   :  { %v330_v44 = vpop.xlane.xlu0 %329 }
 0x305   :  { %492 = vpow2.f32 %v333_v43  ;;  %v332_v45 = vsub.f32 %v323_v39, %v330_v44 }
 0x307   :  { %v335_v46 = vmul.f32 1.442695, %v332_v45 }
 0x309   :  { %494 = vpow2.f32 %v335_v46 }
 0x312   :  { %v493_v47 = vpop.eup %492 }
 0x313   :  { %337 = vadd.xlane.f32.xlu1 %v493_v47 }
 0x316   :  { %v495_v48 = vpop.eup %494 }
 0x317   :  { %339 = vadd.xlane.f32.xlu1 %v495_v48 }
 0x39c   :  { %v338_v49 = vpop.xlane.xlu1 %337 }
 0x39d   :  { %496 = vrcp.f32 %v338_v49 }
 0x3a0   :  { %v340_v50 = vpop.xlane.xlu1 %339 }
 0x3a1   :  { %498 = vrcp.f32 %v340_v50 }
 0x3aa   :  { %v497_v51 = vpop.eup %496 }
 0x3ab   :  { %v342_v53 = vmul.f32 %v497_v51, %v493_v47 }
 0x3ae   :  { %v499_v52 = vpop.eup %498 }
 0x3af   :  { %v344_v54 = vmul.f32 %v499_v52, %v495_v48 }
 0x3b1   :  { %v399_v55 = vpack.c.bf16 %v344_v54, %v342_v53 }
 0x3b3   :  { %400 = vst [vmem:[#allocation7] sm:$0xff] %v399_v55  }
 0x3b4   :  { %551 = shalt.err (!%p548_p0)
}
 0x3b5   :  { %366 = dma.vmem_to_hbm [thread:$0]  %s361_s1, 128, %s628_s2, [#allocation4], %s567_s12, %s567_s12, %s568_s13  }
 0x3b6   :  { %564 = dma.done.wait [#allocation4], 128  }
 0x3b7   :  { %565 = vsyncadd [#allocation4], 4294967168 }
 0x3b8   :  { %370 = vsyncpa [#allocation3], 1 }
 0x3b9   :  { %371 = vsyncpa [#allocation6], 1 }
 0x3ba   :  { %372 = vsyncpa [#allocation4], 1 }

</bundles_post_ra>
